<compile_context>
chip_gen: v7x
topology: tpu7x:2x2x1
jax: 0.10.0
libtpu: 0.0.40
codegen_flags: <defaults>
</compile_context>

<pallas_src>
import functools

import jax
import jax.numpy as jnp
from jax import lax
from jax.experimental import pallas as pl
from jax.experimental.pallas import tpu as pltpu


def _aux_head_kernel(x_ref, w1_ref, b1_ref, w2_ref, b2_ref, o_ref, *, tb, hw):
    w1 = w1_ref[...]                        # [C_mid, C_in]
    b1 = b1_ref[...]                        # [C_mid, 1]
    w2 = w2_ref[...]                        # [C_mid, NCp]  (pre-scaled by 1/HW)
    b2 = b2_ref[...]                        # [1, NCp]

    ones_row = jnp.ones((1, hw), jnp.float32)

    pooled_rows = []
    for b in range(tb):                     # unrolled at trace time (tb static)
        xb = x_ref[b]                       # [C_in, HW]   (HW on the lane axis)
        # 1x1 conv == channel matmul + bias, then ReLU.
        hb = jnp.dot(w1, xb, preferred_element_type=jnp.float32) + b1   # [C_mid, HW]
        hb = jnp.maximum(hb, 0.0)
        # Global average pool: spatial sum on the MXU (1/HW folded into w2).
        pb = lax.dot_general(ones_row, hb, (((1,), (1,)), ((), ())),
                             preferred_element_type=jnp.float32)        # [1, C_mid]
        pooled_rows.append(pb)
    pooled = jnp.concatenate(pooled_rows, axis=0)                       # [TB, C_mid]

    # Final Linear over the whole batch tile (M = TB), lane-dense output.
    logits = jnp.dot(pooled, w2, preferred_element_type=jnp.float32) + b2  # [TB, NCp]
    o_ref[...] = logits.astype(o_ref.dtype)


def aux_classifier_forward(x_nchw, conv_w, conv_b, fc_w, fc_b):
    """Pallas AuxClassifier.forward for the conv1x1 -> ReLU -> GAP -> Linear stack.

    Args:
      x_nchw: [B, C_in, H, W] float32 (PyTorch NCHW convention).
      conv_w: [C_mid, C_in, 1, 1] 1x1-conv weight (PyTorch layout).
      conv_b: [C_mid]
      fc_w:   [NUM_CLASSES, C_mid] Linear weight (PyTorch layout).
      fc_b:   [NUM_CLASSES]

    Returns:
      (logits [B, NUM_CLASSES], features []) — matching the module's (x, features).
    """
    B, C_in, H, W = x_nchw.shape
    C_mid = conv_w.shape[0]
    NC = fc_w.shape[0]
    HW = H * W

    # ---- trace-time parameter prep (tiny tensors, fused by XLA) ------------
    w1 = conv_w.reshape(C_mid, C_in).astype(jnp.float32)      # used as w1 @ x
    b1 = conv_b.reshape(C_mid, 1).astype(jnp.float32)
    NCp = ((NC + 127) // 128) * 128                           # lane-dense output width
    w2 = jnp.zeros((C_mid, NCp), jnp.float32).at[:, :NC].set(fc_w.T / HW)
    b2 = jnp.zeros((1, NCp), jnp.float32).at[:, :NC].set(fc_b[None, :])

    # ---- input: NCHW -> [B, C_in, H*W] is a free reshape (no HBM transpose) -
    x = x_nchw.reshape(B, C_in, HW).astype(jnp.float32)

    # ---- batch tiling -------------------------------------------------------
    # TB amortizes per-grid-step overhead; for B > 8 we use TB = 8 (keeps the
    # output block's sublane dim a multiple of 8 and gives >=2 grid steps for
    # megacore sharding on realistic batches).
    # TODO(synk): for very large H*W add an HW-reduction grid axis ("arbitrary")
    # with a VMEM pooled-sum accumulator so VMEM stays bounded independent of HW.
    TB = B if B <= 8 else 8
    Bp = pl.cdiv(B, TB) * TB
    if Bp != B:
        x = jnp.pad(x, ((0, Bp - B), (0, 0), (0, 0)))         # padded rows sliced off below

    grid = (Bp // TB,)

    grid_spec = pltpu.PrefetchScalarGridSpec(
        num_scalar_prefetch=0,
        grid=grid,
        in_specs=[
            pl.BlockSpec((TB, C_in, HW), lambda b: (b, 0, 0)),
            pl.BlockSpec((C_mid, C_in), lambda b: (0, 0)),
            pl.BlockSpec((C_mid, 1), lambda b: (0, 0)),
            pl.BlockSpec((C_mid, NCp), lambda b: (0, 0)),
            pl.BlockSpec((1, NCp), lambda b: (0, 0)),
        ],
        out_specs=pl.BlockSpec((TB, NCp), lambda b: (b, 0)),
    )

    logits_padded = pl.pallas_call(
        functools.partial(_aux_head_kernel, tb=TB, hw=HW),
        out_shape=jax.ShapeDtypeStruct((Bp, NCp), jnp.float32),
        grid_spec=grid_spec,
        compiler_params=pltpu.CompilerParams(
            dimension_semantics=("parallel",)),
    )(x, w1, b1, w2, b2)

    logits = logits_padded[:B, :NC]
    # feat_class = () and n_last = 0 in the reference module -> no features.
    features = []
    return logits, features


def _reference(x_nchw, conv_w, conv_b, fc_w, fc_b):
    # Pure-JAX reference of the same layer stack for a numerical sanity check.
    B, C_in, H, W = x_nchw.shape
    C_mid = conv_w.shape[0]
    x = x_nchw.reshape(B, C_in, H * W)
    h = jnp.maximum(
        jnp.einsum("mc,bch->bmh", conv_w.reshape(C_mid, C_in), x)
        + conv_b[None, :, None], 0.0)
    pooled = h.mean(axis=-1)                                   # [B, C_mid]
    return pooled @ fc_w.T + fc_b[None, :]


if __name__ == "__main__":
    B, C_in, H, W = 2, 4, 16, 16
    C_mid, NUM_CLASSES = 32, 8

    key = jax.random.PRNGKey(0)
    k_x, k_w1, k_b1, k_w2, k_b2 = jax.random.split(key, 5)

    x = jax.random.normal(k_x, (B, C_in, H, W), dtype=jnp.float32)
    conv_w = jax.random.normal(k_w1, (C_mid, C_in, 1, 1), dtype=jnp.float32) * 0.1
    conv_b = jax.random.normal(k_b1, (C_mid,), dtype=jnp.float32) * 0.1
    fc_w = jax.random.normal(k_w2, (NUM_CLASSES, C_mid), dtype=jnp.float32) * 0.1
    fc_b = jax.random.normal(k_b2, (NUM_CLASSES,), dtype=jnp.float32) * 0.1

    fwd = jax.jit(aux_classifier_forward)
    logits, features = fwd(x, conv_w, conv_b, fc_w, fc_b)
    logits = jax.block_until_ready(logits)

    ref = _reference(x, conv_w, conv_b, fc_w, fc_b)
    assert logits.shape == (B, NUM_CLASSES)
    assert features == []
    assert jnp.allclose(logits, ref, atol=1e-4, rtol=1e-4)

    print("KERNEL_OK")
</pallas_src>

<mosaic_0001>
module attributes {stable_mosaic.version = 11 : i64} {
  func.func @_aux_head_kernel(%arg0: i32, %arg1: memref<2x4x256xf32, #tpu.memory_space<vmem>>, %arg2: memref<32x4xf32, #tpu.memory_space<vmem>>, %arg3: memref<32x1xf32, #tpu.memory_space<vmem>>, %arg4: memref<32x128xf32, #tpu.memory_space<vmem>>, %arg5: memref<1x128xf32, #tpu.memory_space<vmem>>, %arg6: memref<2x128xf32, #tpu.memory_space<vmem>>) attributes {dimension_semantics = [#tpu.dimension_semantics<parallel>], iteration_bounds = array<i64: 1>, scalar_prefetch = 0 : i64, scratch_operands = 0 : i64, tpu.core_type = #tpu.core_type<tc>, window_params = [{transform_indices = @transform_0, window_bounds = array<i64: 2, 4, 256>}, {pipeline_mode = #tpu.pipeline_mode<synchronous>, transform_indices = @transform_1, window_bounds = array<i64: 32, 4>}, {pipeline_mode = #tpu.pipeline_mode<synchronous>, transform_indices = @transform_2, window_bounds = array<i64: 32, 1>}, {pipeline_mode = #tpu.pipeline_mode<synchronous>, transform_indices = @transform_3, window_bounds = array<i64: 32, 128>}, {pipeline_mode = #tpu.pipeline_mode<synchronous>, transform_indices = @transform_4, window_bounds = array<i64: 1, 128>}, {transform_indices = @transform_5, window_bounds = array<i64: 2, 128>}]} {
    %c0 = arith.constant 0 : index
    %c0_0 = arith.constant 0 : index
    %0 = vector.load %arg2[%c0, %c0_0] : memref<32x4xf32, #tpu.memory_space<vmem>>, vector<32x4xf32>
    %c0_1 = arith.constant 0 : index
    %c0_2 = arith.constant 0 : index
    %1 = vector.load %arg3[%c0_1, %c0_2] : memref<32x1xf32, #tpu.memory_space<vmem>>, vector<32x1xf32>
    %c0_3 = arith.constant 0 : index
    %c0_4 = arith.constant 0 : index
    %2 = vector.load %arg4[%c0_3, %c0_4] : memref<32x128xf32, #tpu.memory_space<vmem>>, vector<32x128xf32>
    %c0_5 = arith.constant 0 : index
    %c0_6 = arith.constant 0 : index
    %3 = vector.load %arg5[%c0_5, %c0_6] : memref<1x128xf32, #tpu.memory_space<vmem>>, vector<1x128xf32>
    %cst = arith.constant 1.000000e+00 : f32
    %4 = vector.broadcast %cst : f32 to vector<1x256xf32>
    %c0_7 = arith.constant 0 : index
    %c0_8 = arith.constant 0 : index
    %c0_9 = arith.constant 0 : index
    %5 = vector.load %arg1[%c0_7, %c0_8, %c0_9] : memref<2x4x256xf32, #tpu.memory_space<vmem>>, vector<1x4x256xf32>
    %6 = vector.shape_cast %5 : vector<1x4x256xf32> to vector<4x256xf32>
    %cst_10 = arith.constant dense<0.000000e+00> : vector<32x256xf32>
    %7 = tpu.matmul %0, %6, %cst_10 {dimension_numbers = #tpu.dot_dimension_numbers<[1], [0], [0], [1], [0, 0, 1, 1], [], []>} : vector<32x4xf32>, vector<4x256xf32>, vector<32x256xf32> -> vector<32x256xf32>
    %8 = vector.broadcast %1 : vector<32x1xf32> to vector<32x256xf32>
    %9 = arith.addf %7, %8 : vector<32x256xf32>
    %cst_11 = arith.constant 0.000000e+00 : f32
    %10 = vector.broadcast %cst_11 : f32 to vector<32x256xf32>
    %11 = arith.maximumf %9, %10 : vector<32x256xf32>
    %cst_12 = arith.constant dense<0.000000e+00> : vector<1x32xf32>
    %12 = tpu.matmul %4, %11, %cst_12 {dimension_numbers = #tpu.dot_dimension_numbers<[1], [1], [0], [0], [0, 0, 1, 0], [], []>} : vector<1x256xf32>, vector<32x256xf32>, vector<1x32xf32> -> vector<1x32xf32>
    %c1 = arith.constant 1 : index
    %c0_13 = arith.constant 0 : index
    %c0_14 = arith.constant 0 : index
    %13 = vector.load %arg1[%c1, %c0_13, %c0_14] : memref<2x4x256xf32, #tpu.memory_space<vmem>>, vector<1x4x256xf32>
    %14 = vector.shape_cast %13 : vector<1x4x256xf32> to vector<4x256xf32>
    %cst_15 = arith.constant dense<0.000000e+00> : vector<32x256xf32>
    %15 = tpu.matmul %0, %14, %cst_15 {dimension_numbers = #tpu.dot_dimension_numbers<[1], [0], [0], [1], [0, 0, 1, 1], [], []>} : vector<32x4xf32>, vector<4x256xf32>, vector<32x256xf32> -> vector<32x256xf32>
    %16 = vector.broadcast %1 : vector<32x1xf32> to vector<32x256xf32>
    %17 = arith.addf %15, %16 : vector<32x256xf32>
    %cst_16 = arith.constant 0.000000e+00 : f32
    %18 = vector.broadcast %cst_16 : f32 to vector<32x256xf32>
    %19 = arith.maximumf %17, %18 : vector<32x256xf32>
    %cst_17 = arith.constant dense<0.000000e+00> : vector<1x32xf32>
    %20 = tpu.matmul %4, %19, %cst_17 {dimension_numbers = #tpu.dot_dimension_numbers<[1], [1], [0], [0], [0, 0, 1, 0], [], []>} : vector<1x256xf32>, vector<32x256xf32>, vector<1x32xf32> -> vector<1x32xf32>
    %21 = tpu.concatenate %12, %20 in 0 : vector<1x32xf32>, vector<1x32xf32> -> vector<2x32xf32>
    %cst_18 = arith.constant dense<0.000000e+00> : vector<2x128xf32>
    %22 = tpu.matmul %21, %2, %cst_18 {dimension_numbers = #tpu.dot_dimension_numbers<[1], [0], [0], [1], [0, 0, 1, 1], [], []>} : vector<2x32xf32>, vector<32x128xf32>, vector<2x128xf32> -> vector<2x128xf32>
    %23 = vector.broadcast %3 : vector<1x128xf32> to vector<2x128xf32>
    %24 = arith.addf %22, %23 : vector<2x128xf32>
    %c0_19 = arith.constant 0 : index
    %c0_20 = arith.constant 0 : index
    %25 = vector.load %arg6[%c0_19, %c0_20] : memref<2x128xf32, #tpu.memory_space<vmem>>, vector<2x128xf32>
    tpu.vector_store %arg6[%c0_19, %c0_20], %24 {strides = array<i32>} : memref<2x128xf32, #tpu.memory_space<vmem>>, vector<2x128xf32>,
    return
  }
  func.func @transform_0(%arg0: i32) -> (i32, i32, i32) {
    %c0_i32 = arith.constant 0 : i32
    %c0_i32_0 = arith.constant 0 : i32
    %c0_i32_1 = arith.constant 0 : i32
    return %arg0, %c0_i32, %c0_i32_0 : i32, i32, i32
  }
  func.func @transform_1(%arg0: i32) -> (i32, i32) {
    %c0_i32 = arith.constant 0 : i32
    %c0_i32_0 = arith.constant 0 : i32
    %c0_i32_1 = arith.constant 0 : i32
    return %c0_i32, %c0_i32_0 : i32, i32
  }
  func.func @transform_2(%arg0: i32) -> (i32, i32) {
    %c0_i32 = arith.constant 0 : i32
    %c0_i32_0 = arith.constant 0 : i32
    %c0_i32_1 = arith.constant 0 : i32
    return %c0_i32, %c0_i32_0 : i32, i32
  }
  func.func @transform_3(%arg0: i32) -> (i32, i32) {
    %c0_i32 = arith.constant 0 : i32
    %c0_i32_0 = arith.constant 0 : i32
    %c0_i32_1 = arith.constant 0 : i32
    return %c0_i32, %c0_i32_0 : i32, i32
  }
  func.func @transform_4(%arg0: i32) -> (i32, i32) {
    %c0_i32 = arith.constant 0 : i32
    %c0_i32_0 = arith.constant 0 : i32
    %c0_i32_1 = arith.constant 0 : i32
    return %c0_i32, %c0_i32_0 : i32, i32
  }
  func.func @transform_5(%arg0: i32) -> (i32, i32) {
    %c0_i32 = arith.constant 0 : i32
    %c0_i32_0 = arith.constant 0 : i32
    return %arg0, %c0_i32 : i32, i32
  }
}

</mosaic_0001>

<bundles_post_ra>
// kernel: aux_classifier_forward.1
= control target key start
LH: loop header
LB: loop body
LE: loop exit
PB: predicated region body
PF: predicated region fallthrough
CT: control target
= control target key end

     0   :  { %vm70_vm0 = vcmask 1043456   ;;  %v604_v3 = vmov 0.0   ;;  %vm57_vm1 = vcmask 31744   ;;  %v605_v6 = vmov 0   ;;  %s722_s0 = inlined_call_operand.vmem [shape: f32[2,4,256], index: 0, kind: input, shape index: {}]   ;;  %s723_s1 = inlined_call_operand.vmem [shape: f32[32,4], index: 1, kind: input, shape index: {}]   ;;  %s724_s2 = inlined_call_operand.vmem [shape: f32[32,1], index: 2, kind: input, shape index: {}]   ;;  %s725_s3 = inlined_call_operand.vmem [shape: f32[32,128], index: 3, kind: input, shape index: {}]   ;;  %s726_s4 = inlined_call_operand.vmem [shape: f32[1,128], index: 4, kind: input, shape index: {}]   ;;  %s727_s5 = inlined_call_operand.hbm [shape: f32[2,128], index: 5, kind: output, shape index: {}]  }
   0x1   :  { %v34_v0 = vld [vmem:[%s722_s0] sm:$0xff]  ;;  %v523_v1 = vld [vmem:[%s722_s0 + $0x8] sm:$0xff]  ;;  %139 = vmatprep.mubr.f32.mxu0 %v604_v3  ;;  %576 = vset.pattern.permute.xlu0 %v605_v6  ;;  %v27_v8 = vld [vmem:[%s724_s2 + $0x10] sm:$0xff] }
   0x2   :  { %v56_v2 = vcombine.high %v34_v0, %v34_v0  ;;  %v245_v4 = vcombine.high %v523_v1, %v523_v1  ;;  %v21_v5 = vld [vmem:[%s723_s1] sm:$0xff]  ;;  %577 = vset.pattern.permute.xlu1 %v605_v6 }
   0x3   :  { %v25_v7 = vld [vmem:[%s724_s2] sm:$0xff] }
   0x4   :  { %517 = vmatprep.subr.msk.mxu0 %vm70_vm0, %v56_v2  ;;  %37 = vperm.xlu0 %576, %v25_v7  }
   0x5   :  { %10 = vsyncpa [#allocation3], 0  ;;  %518 = vmatpush1.msk.msra.mxu0 %vm70_vm0, %v34_v0  ;;  %v26_v9 = vld [vmem:[%s724_s2 + $0x8] sm:$0xff]  ;;  %47 = vperm.xlu1 %577, %v27_v8   ;;  %v28_v10 = vld [vmem:[%s724_s2 + $0x18] sm:$0xff]  ;;  %v606_v14 = vmov 1.0   ;;  %vm608_vm2 = vmmov 0  }
   0x6   :  { %519 = vmatmul.mubr.msk.f32.vlgmr.msra.gmra.mrb[0].mxu0 %vm57_vm1, %v21_v5  ;;  %524 = vmatprep.subr.msk.mxu0 %vm70_vm0, %v245_v4  ;;  %v22_v11 = vld [vmem:[%s723_s1 + $0x8] sm:$0xff]  ;;  %v23_v12 = vld [vmem:[%s723_s1 + $0x10] sm:$0xff]  ;;  %v24_v13 = vld [vmem:[%s723_s1 + $0x18] sm:$0xff]  ;;  %vm420_vm3 = vcmask 1040384   ;;  %vm428_vm4 = vcmask 261120  }
   0x7   :  { %525 = vmatpush1.msk.msra.mxu0 %vm70_vm0, %v523_v1  ;;  %145 = vmatprep.mubr.f32.mxu0 %v604_v3 }
   0x8   :  { %42 = vperm.xlu0 %576, %v26_v9   ;;  %236 = vmatprep.mubr.f32.mxu1 %v606_v14 }
   0x9   :  { %52 = vperm.xlu1 %577, %v28_v10  }
   0xa   :  { %520 = vmatmul.mubr.msk.f32.gmra.mrb[2].mxu0 %vm57_vm1, %v22_v11 }
   0xb   :  { %151 = vmatprep.mubr.f32.mxu0 %v604_v3 }
   0xe   :  { %521 = vmatmul.mubr.msk.f32.gmra.mrb[4].mxu0 %vm57_vm1, %v23_v12 }
   0xf   :  { %157 = vmatprep.mubr.f32.mxu0 %v604_v3 }
  0x12   :  { %522 = vmatmul.mubr.msk.f32.gmra.mrb[6].mxu0 %vm57_vm1, %v24_v13 }
  0x13   :  { %314 = vmatprep.mubr.f32.mxu0 %v604_v3 }
  0x16   :  { %526 = vmatmul.mubr.msk.f32.vlgmr.msra.gmra.mrb[8].mxu0 %vm57_vm1, %v21_v5 }
  0x17   :  { %320 = vmatprep.mubr.f32.mxu0 %v604_v3 }
  0x1a   :  { %527 = vmatmul.mubr.msk.f32.gmra.mrb[10].mxu0 %vm57_vm1, %v22_v11 }
  0x1b   :  { %326 = vmatprep.mubr.f32.mxu0 %v604_v3 }
  0x1e   :  { %528 = vmatmul.mubr.msk.f32.gmra.mrb[12].mxu0 %vm57_vm1, %v23_v12  ;;  %v29_v12 = vld [vmem:[%s725_s3] sm:$0xff] }
  0x1f   :  { %332 = vmatprep.mubr.f32.mxu0 %v604_v3 }
  0x22   :  { %529 = vmatmul.mubr.msk.f32.gmra.mrb[14].mxu0 %vm57_vm1, %v24_v13  ;;  %v30_v13 = vld [vmem:[%s725_s3 + $0x8] sm:$0xff] }
  0x23   :  { %545 = vmatprep.mubr.msk.f32.mxu0 %vm608_vm2, %v604_v3 }
  0x83   :  { %v38_v15 = vpop.permute.xlu0 %37 }
  0x84   :  { %v48_v25 = vpop.permute.xlu1 %47 }
  0x87   :  { %v43_v20 = vpop.permute.xlu0 %42 }
  0x88   :  { %v53_v36 = vpop.permute.xlu1 %52 }
  0xd9   :  { %v141_v16 = vpop.f32.mrb[0].mxu0 }
  0xda   :  { %v143_v17 = vpop.f32.mrb[1].mxu0  ;;  %v142_v18 = vadd.f32 %v141_v16, %v38_v15  ;;  %v607_v16 = vmov 0.0|0.0  }
  0xdb   :  { %v144_v19 = vadd.f32 %v143_v17, %v38_v15  ;;  %564 = vmatprep.subr.bf16.mxu0 %v607_v16  ;;  %v565_v17 = vpack.c.bf16 %v30_v13, %v29_v12 }
  0xdc   :  { %v164_v26 = vmax.f32 %v142_v18, 0.0  ;;  %v32_v18 = vld [vmem:[%s725_s3 + $0x18] sm:$0xff] }
  0xdd   :  { %v147_v21 = vpop.f32.mrb[2].mxu0  ;;  %v165_v28 = vmax.f32 %v144_v19, 0.0  ;;  %566 = vmatpush3.bf16.msra.mxu0 %v565_v17 }
  0xde   :  { %v148_v22 = vadd.f32 %v147_v21, %v43_v20  ;;  %v149_v23 = vpop.f32.mrb[3].mxu0  ;;  %567 = vmatprep.subr.bf16.mxu0 %v607_v16 }
  0xdf   :  { %v150_v24 = vadd.f32 %v149_v23, %v43_v20 }
  0xe0   :  { %v166_v27 = vmax.f32 %v148_v22, 0.0 }
  0xe1   :  { %v167_v29 = vmax.f32 %v150_v24, 0.0  ;;  %v153_v30 = vpop.f32.mrb[4].mxu0 }
  0xe2   :  { %v155_v31 = vpop.f32.mrb[5].mxu0  ;;  %v550_v32 = vpack.c.bf16 %v166_v27, %v164_v26  ;;  %v154_v34 = vadd.f32 %v153_v30, %v48_v25 }
  0xe3   :  { %v548_v33 = vpack.c.bf16 %v167_v29, %v165_v28  ;;  %v156_v35 = vadd.f32 %v155_v31, %v48_v25 }
  0xe4   :  { %v168_v41 = vmax.f32 %v154_v34, 0.0 }
  0xe5   :  { %v159_v37 = vpop.f32.mrb[6].mxu0  ;;  %549 = vmatprep.subr.bf16.mxu1 %v548_v33  ;;  %v169_v43 = vmax.f32 %v156_v35, 0.0 }
  0xe6   :  { %v160_v38 = vadd.f32 %v159_v37, %v53_v36  ;;  %v161_v39 = vpop.f32.mrb[7].mxu0  ;;  %551 = vmatpush1.bf16.xpose.msra.mxu1 %v550_v32 }
  0xe7   :  { %v162_v40 = vadd.f32 %v161_v39, %v53_v36 }
  0xe8   :  { %v170_v42 = vmax.f32 %v160_v38, 0.0 }
  0xe9   :  { %v171_v44 = vmax.f32 %v162_v40, 0.0  ;;  %v316_v45 = vpop.f32.mrb[8].mxu0 }
  0xea   :  { %v554_v46 = vpack.c.bf16 %v170_v42, %v168_v41  ;;  %v318_v47 = vpop.f32.mrb[9].mxu0  ;;  %v317_v49 = vadd.f32 %v316_v45, %v38_v15 }
  0xeb   :  { %v552_v48 = vpack.c.bf16 %v171_v44, %v169_v43  ;;  %v319_v50 = vadd.f32 %v318_v47, %v38_v15  ;;  %v31_v15 = vld [vmem:[%s725_s3 + $0x10] sm:$0xff]  ;;  %s609_s3 = smov [#allocation2]  }
  0xec   :  { %v339_v55 = vmax.f32 %v317_v49, 0.0  ;;  %s509_s20 = sshll.u32 %s609_s3, 4  ;;  %s510_s20 = int_to_ptr.vmem [resolvable:$true] %s509_s20 }
  0xed   :  { %553 = vmatprep.subr.bf16.mxu1 %v552_v48  ;;  %v322_v51 = vpop.f32.mrb[10].mxu0  ;;  %v340_v57 = vmax.f32 %v319_v50, 0.0  ;;  %s580_s21 = scalar_lea.vmem %s510_s20, 32  ;;  %p585_p1 = scmp.lt.s32.totalorder %s510_s20, %s510_s20 }
  0xee   :  { %v323_v52 = vadd.f32 %v322_v51, %v43_v20  ;;  %555 = vmatpush1.bf16.xpose.msra.mxu1 %v554_v46  ;;  %v324_v53 = vpop.f32.mrb[11].mxu0  ;;  %p581_p0 = scmp.ne.s32.totalorder %s510_s20, %s580_s21  ;;  %p586_p2 = scmp.lt.s32.totalorder %s580_s21, %s580_s21 }
  0xef   :  { %v325_v54 = vadd.f32 %v324_v53, %v43_v20 }
  0xf0   :  { %v341_v56 = vmax.f32 %v323_v52, 0.0  ;;  %p587_p3 = por %p586_p2, %p585_p1 }
  0xf1   :  { %v342_v58 = vmax.f32 %v325_v54, 0.0  ;;  %v328_v59 = vpop.f32.mrb[12].mxu0 }
  0xf2   :  { %v558_v60 = vpack.c.bf16 %v341_v56, %v339_v55  ;;  %v330_v61 = vpop.f32.mrb[13].mxu0  ;;  %v329_v63 = vadd.f32 %v328_v59, %v48_v25  ;;  %p588_p4 = pnand %p587_p3, %p581_p0 }
  0xf3   :  { %v556_v62 = vpack.c.bf16 %v342_v58, %v340_v57  ;;  %v331_v0 = vadd.f32 %v330_v61, %v48_v25  ;;  %v530_v25 = vld [vmem:[%s726_s4] ss:$0 sm:$0xff] }
  0xf4   :  { %v343_v6 = vmax.f32 %v329_v63, 0.0 }
  0xf5   :  { %v334_v1 = vpop.f32.mrb[14].mxu0  ;;  %557 = vmatprep.subr.bf16.mxu1 %v556_v62  ;;  %237 = vmatmul.mubr.f32.vlgmr.msra.gmra.mrb[0].mxu1 %v606_v14  ;;  %v344_v8 = vmax.f32 %v331_v0, 0.0 }
  0xf6   :  { %v335_v2 = vadd.f32 %v334_v1, %v53_v36  ;;  %v336_v4 = vpop.f32.mrb[15].mxu0  ;;  %559 = vmatpush1.bf16.xpose.msra.mxu1 %v558_v60  ;;  %411 = vmatprep.mubr.f32.mxu1 %v606_v14 }
  0xf7   :  { %v337_v5 = vadd.f32 %v336_v4, %v53_v36 }
  0xf8   :  { %v345_v7 = vmax.f32 %v335_v2, 0.0 }
  0xf9   :  { %v346_v9 = vmax.f32 %v337_v5, 0.0 }
  0xfa   :  { %v562_v10 = vpack.c.bf16 %v345_v7, %v343_v6 }
  0xfb   :  { %v560_v11 = vpack.c.bf16 %v346_v9, %v344_v8 }
  0xfd   :  { %561 = vmatprep.subr.bf16.mxu1 %v560_v11 }
  0xfe   :  { %563 = vmatpush1.bf16.xpose.msra.mxu1 %v562_v10 }
 0x105   :  { %412 = vmatmul.mubr.f32.vlgmr.msra.gmra.mrb[2].mxu1 %v606_v14  ;;  %v568_v14 = vpack.c.bf16 %v32_v18, %v31_v15 }
 0x107   :  { %569 = vmatpush3.bf16.msra.mxu0 %v568_v14 }
 0x1c8   :  { %v238_v19 = vpop.f32.mrb[0].mxu1 }
 0x1c9   :  { %v240_v20 = vpop.f32.mrb[1].mxu1 }
 0x1d8   :  { %v413_v21 = vpop.f32.mrb[2].mxu1 }
 0x1d9   :  { %v418_v22 = vrot.slane %v413_v21, 7  ;;  %v415_v23 = vpop.f32.mrb[3].mxu1 }
 0x1db   :  { %v421_v24 = vsel %vm420_vm3, %v238_v19, %v418_v22 }
 0x1dc   :  { %546 = vmatmul.mubr.msk.f32.vlgmr.msra.gmra.mrb[16].mxu0 %vm428_vm4, %v421_v24 }
 0x2af   :  { %v498_v26 = vpop.f32.mrb[16].mxu0 }
 0x2b0   :  { %v499_v27 = vadd.f32 %v530_v25, %v498_v26  ;;  %v547_v28 = vpop.f32.mrb[17].mxu0 }
 0x2b2   :  { %502 = vst [vmem:[#allocation2] sm:$0x3] %v499_v27 }
 0x2b3   :  { %591 = shalt.err (!%p588_p4)
}
 0x2b4   :  { %s592_s24 = scalar_lea.hbm %s727_s5, 32 }
 0x2b5   :  { %p593_p5 = scmp.ne.s32.totalorder %s727_s5, %s592_s24  ;;  %p596_p6 = scmp.lt.u32.totalorder %s592_s24, %s727_s5 }
 0x2b7   :  { %p598_p7 = pnand %p596_p6, %p593_p5 }
 0x2b9   :  { %601 = shalt.err (!%p598_p7)
}
 0x2ba   :  { %512 = dma.vmem_to_hbm [thread:$0]  %s510_s20, 32, %s727_s5, [#allocation3]  }
 0x2bb   :  { %602 = dma.done.wait [#allocation3], 32  }
 0x2bc   :  { %603 = vsyncadd [#allocation3], 4294967264 }
 0x2bd   :  { %516 = vsyncpa [#allocation3], 1 }

</bundles_post_ra>
